<compile_context>
chip_gen: v7x
topology: tpu7x:2x2x1
jax: 0.10.0
libtpu: 0.0.40
codegen_flags: <defaults>
</compile_context>

<pallas_src>
import functools

import jax
import jax.numpy as jnp
from jax.experimental import pallas as pl
from jax.experimental.pallas import tpu as pltpu


# Safe on every generation: v5e/v6e have 128 MiB physical VMEM, v7x has 64 MiB.
_VMEM_LIMIT_BYTES = 48 * 1024 * 1024     # scoped VMEM limit requested from Mosaic
_INPUT_VMEM_BUDGET = 32 * 1024 * 1024    # budget for double-buffered feature tiles


def _pool_fc_kernel(x_rgb_ref, x_flow_ref, x_pose_ref,
                    w_rgb_ref, w_flow_ref, w_pose_ref, b_ref,
                    o_ref,
                    acc_rgb, acc_flow, acc_pose,
                    *, total_s, tile_s, needs_mask):
    """Accumulate per-stream spatial sums; fused FC epilogue on the last step.

    x_*_ref : (B, C_i, tile_s)  one spatial tile of a backbone feature stream
    w_*_ref : (C_i, N)          channel-slab of the fc weight (torch W^T slices)
    b_ref   : (1, N)            fc bias
    o_ref   : (B, N)            logits
    acc_*   : (B, C_i) f32      running spatial sums (VMEM scratch)
    """
    k = pl.program_id(0)

    @pl.when(k == 0)
    def _():
        acc_rgb[...] = jnp.zeros_like(acc_rgb)
        acc_flow[...] = jnp.zeros_like(acc_flow)
        acc_pose[...] = jnp.zeros_like(acc_pose)

    def tile_sum(x_ref):
        x = x_ref[...].astype(jnp.float32)               # (B, C_i, tile_s)
        if needs_mask:
            # Zero the padded tail of the (possibly partial) last tile.
            s_idx = jax.lax.broadcasted_iota(jnp.int32, x.shape, dimension=2)
            valid = (s_idx + k * tile_s) < total_s
            x = jnp.where(valid, x, 0.0)
        return jnp.sum(x, axis=-1)                       # (B, C_i)

    acc_rgb[...] += tile_sum(x_rgb_ref)
    acc_flow[...] += tile_sum(x_flow_ref)
    acc_pose[...] += tile_sum(x_pose_ref)

    @pl.when(k == pl.num_programs(0) - 1)
    def _():
        inv_s = 1.0 / float(total_s)
        logits = (
            jnp.dot(acc_rgb[...] * inv_s, w_rgb_ref[...],
                    preferred_element_type=jnp.float32)
            + jnp.dot(acc_flow[...] * inv_s, w_flow_ref[...],
                      preferred_element_type=jnp.float32)
            + jnp.dot(acc_pose[...] * inv_s, w_pose_ref[...],
                      preferred_element_type=jnp.float32)
            + b_ref[...]
        )
        o_ref[...] = logits.astype(o_ref.dtype)


def select_model_head(feat_rgb, feat_flow, feat_pose, fc_w, fc_b, *, tile_s=None):
    """feat_* : (B, C_i, T, H, W) backbone feature maps (NCTHW, f32 or bf16).
    fc_w    : (C_rgb + C_flow + C_pose, num_classes)  (torch Linear weight^T)
    fc_b    : (num_classes,)
    Returns : (B, num_classes) f32 logits.
    """
    B, C_rgb = feat_rgb.shape[:2]
    C_flow = feat_flow.shape[1]
    C_pose = feat_pose.shape[1]
    T, H, W = feat_rgb.shape[2:]
    assert feat_flow.shape[0] == B and feat_pose.shape[0] == B
    assert feat_flow.shape[2:] == (T, H, W) and feat_pose.shape[2:] == (T, H, W)
    S = T * H * W
    C_tot = C_rgb + C_flow + C_pose
    N = fc_w.shape[1]
    assert fc_w.shape[0] == C_tot

    # Native-layout reshape only (free on contiguous NCTHW): no concat/transpose,
    # so each feature byte is read from HBM exactly once, by the kernel.
    x_rgb = feat_rgb.reshape(B, C_rgb, S)
    x_flow = feat_flow.reshape(B, C_flow, S)
    x_pose = feat_pose.reshape(B, C_pose, S)

    # Channel-split weight slabs (avoids any in-kernel concat of pooled vectors).
    w_rgb = fc_w[:C_rgb]
    w_flow = fc_w[C_rgb:C_rgb + C_flow]
    w_pose = fc_w[C_rgb + C_flow:]
    fc_b2 = fc_b.reshape(1, N)

    # --- tile_s: biggest spatial tile whose double-buffered blocks fit budget ---
    if tile_s is None:
        itemsize = jnp.dtype(feat_rgb.dtype).itemsize
        bytes_per_s = 2 * B * C_tot * itemsize          # x2 double-buffer, 3 streams
        tile_s = max(1, _INPUT_VMEM_BUDGET // bytes_per_s)
    if tile_s >= S:
        tile_s = S                                      # full axis: always legal
    else:
        tile_s = max(128, (tile_s // 128) * 128)        # lane axis: multiple of 128
        if tile_s >= S:
            tile_s = S

    grid = (pl.cdiv(S, tile_s),)
    needs_mask = (S % tile_s) != 0

    kernel = functools.partial(_pool_fc_kernel, total_s=S, tile_s=tile_s,
                               needs_mask=needs_mask)

    return pl.pallas_call(
        kernel,
        out_shape=jax.ShapeDtypeStruct((B, N), jnp.float32),
        grid_spec=pltpu.PrefetchScalarGridSpec(
            num_scalar_prefetch=0,
            grid=grid,
            in_specs=[
                pl.BlockSpec((B, C_rgb, tile_s), lambda k: (0, 0, k)),
                pl.BlockSpec((B, C_flow, tile_s), lambda k: (0, 0, k)),
                pl.BlockSpec((B, C_pose, tile_s), lambda k: (0, 0, k)),
                pl.BlockSpec((C_rgb, N), lambda k: (0, 0)),
                pl.BlockSpec((C_flow, N), lambda k: (0, 0)),
                pl.BlockSpec((C_pose, N), lambda k: (0, 0)),
                pl.BlockSpec((1, N), lambda k: (0, 0)),
            ],
            out_specs=pl.BlockSpec((B, N), lambda k: (0, 0)),
            scratch_shapes=[
                pltpu.VMEM((B, C_rgb), jnp.float32),
                pltpu.VMEM((B, C_flow), jnp.float32),
                pltpu.VMEM((B, C_pose), jnp.float32),
            ],
        ),
        compiler_params=pltpu.CompilerParams(
            dimension_semantics=("arbitrary",),          # spatial reduction axis
            vmem_limit_bytes=_VMEM_LIMIT_BYTES,
        ),
    )(x_rgb, x_flow, x_pose, w_rgb, w_flow, w_pose, fc_b2)


def reference_head(feat_rgb, feat_flow, feat_pose, fc_w, fc_b):
    x = jnp.concatenate([feat_rgb, feat_flow, feat_pose], axis=1)  # (B,Ct,T,H,W)
    pooled = jnp.mean(x.astype(jnp.float32), axis=(2, 3, 4))       # (B,Ct)
    return pooled @ fc_w + fc_b


if __name__ == "__main__":
    key = jax.random.PRNGKey(0)

    # Small synthetic shapes consistent with the forward: backbone feature maps
    # (B, C_i, T, H, W); real feature_dim would be 512, shrunk to 32 each here.
    B, T, H, W = 2, 4, 8, 8
    C_rgb = C_flow = C_pose = 32
    num_classes = 10

    k1, k2, k3, k4, k5 = jax.random.split(key, 5)
    feat_rgb = jax.random.normal(k1, (B, C_rgb, T, H, W), jnp.float32)
    feat_flow = jax.random.normal(k2, (B, C_flow, T, H, W), jnp.float32)
    feat_pose = jax.random.normal(k3, (B, C_pose, T, H, W), jnp.float32)

    C_tot = C_rgb + C_flow + C_pose
    # torch Linear weight is (num_classes, C_tot); we store the transpose so the
    # kernel does pooled @ W directly.
    fc_w = jax.random.normal(k4, (C_tot, num_classes), jnp.float32) * 0.02
    fc_b = jax.random.normal(k5, (num_classes,), jnp.float32) * 0.02

    # 1) Auto-tiled path (tile_s == S here -> single grid step, no masking).
    out = select_model_head(feat_rgb, feat_flow, feat_pose, fc_w, fc_b)
    out = jax.block_until_ready(out)
    ref = reference_head(feat_rgb, feat_flow, feat_pose, fc_w, fc_b)
    assert out.shape == (B, num_classes)
    assert jnp.allclose(out, ref, atol=1e-4, rtol=1e-4), "mismatch vs reference"

    # 2) Multi-tile + masked-last-tile path (S = 320 not divisible by tile 128).
    T2 = 5
    feat_rgb2 = jax.random.normal(k1, (B, C_rgb, T2, H, W), jnp.float32)
    feat_flow2 = jax.random.normal(k2, (B, C_flow, T2, H, W), jnp.float32)
    feat_pose2 = jax.random.normal(k3, (B, C_pose, T2, H, W), jnp.float32)
    out2 = select_model_head(feat_rgb2, feat_flow2, feat_pose2, fc_w, fc_b,
                             tile_s=128)
    out2 = jax.block_until_ready(out2)
    ref2 = reference_head(feat_rgb2, feat_flow2, feat_pose2, fc_w, fc_b)
    assert jnp.allclose(out2, ref2, atol=1e-4, rtol=1e-4), "mismatch (masked path)"

    print("KERNEL_OK")
</pallas_src>

<mosaic_0001>
module attributes {stable_mosaic.version = 11 : i64} {
  func.func @_pool_fc_kernel(%arg0: i32, %arg1: memref<2x32x256xf32, #tpu.memory_space<vmem>>, %arg2: memref<2x32x256xf32, #tpu.memory_space<vmem>>, %arg3: memref<2x32x256xf32, #tpu.memory_space<vmem>>, %arg4: memref<32x10xf32, #tpu.memory_space<vmem>>, %arg5: memref<32x10xf32, #tpu.memory_space<vmem>>, %arg6: memref<32x10xf32, #tpu.memory_space<vmem>>, %arg7: memref<1x10xf32, #tpu.memory_space<vmem>>, %arg8: memref<2x10xf32, #tpu.memory_space<vmem>>, %arg9: memref<2x32xf32, #tpu.memory_space<vmem>>, %arg10: memref<2x32xf32, #tpu.memory_space<vmem>>, %arg11: memref<2x32xf32, #tpu.memory_space<vmem>>) attributes {dimension_semantics = [#tpu.dimension_semantics<arbitrary>], iteration_bounds = array<i64: 1>, scalar_prefetch = 0 : i64, scratch_operands = 3 : i64, tpu.core_type = #tpu.core_type<tc>, window_params = [{transform_indices = @transform_0, window_bounds = array<i64: 2, 32, 256>}, {transform_indices = @transform_1, window_bounds = array<i64: 2, 32, 256>}, {transform_indices = @transform_2, window_bounds = array<i64: 2, 32, 256>}, {pipeline_mode = #tpu.pipeline_mode<synchronous>, transform_indices = @transform_3, window_bounds = array<i64: 32, 10>}, {pipeline_mode = #tpu.pipeline_mode<synchronous>, transform_indices = @transform_4, window_bounds = array<i64: 32, 10>}, {pipeline_mode = #tpu.pipeline_mode<synchronous>, transform_indices = @transform_5, window_bounds = array<i64: 32, 10>}, {pipeline_mode = #tpu.pipeline_mode<synchronous>, transform_indices = @transform_6, window_bounds = array<i64: 1, 10>}, {pipeline_mode = #tpu.pipeline_mode<synchronous>, transform_indices = @transform_7, window_bounds = array<i64: 2, 10>}]} {
    %c0_i32 = arith.constant 0 : i32
    %0 = arith.cmpi eq, %arg0, %c0_i32 : i32
    %1 = arith.extui %0 : i1 to i32
    %c0_i32_0 = arith.constant 0 : i32
    %2 = arith.cmpi ne, %1, %c0_i32_0 : i32
    scf.if %2 {
      %cst_25 = arith.constant 0.000000e+00 : f32
      %21 = vector.broadcast %cst_25 : f32 to vector<2x32xf32>
      %c0_26 = arith.constant 0 : index
      %c0_27 = arith.constant 0 : index
      %22 = vector.load %arg9[%c0_26, %c0_27] : memref<2x32xf32, #tpu.memory_space<vmem>>, vector<2x32xf32>
      tpu.vector_store %arg9[%c0_26, %c0_27], %21 {strides = array<i32>} : memref<2x32xf32, #tpu.memory_space<vmem>>, vector<2x32xf32>,
      %cst_28 = arith.constant 0.000000e+00 : f32
      %23 = vector.broadcast %cst_28 : f32 to vector<2x32xf32>
      %c0_29 = arith.constant 0 : index
      %c0_30 = arith.constant 0 : index
      %24 = vector.load %arg10[%c0_29, %c0_30] : memref<2x32xf32, #tpu.memory_space<vmem>>, vector<2x32xf32>
      tpu.vector_store %arg10[%c0_29, %c0_30], %23 {strides = array<i32>} : memref<2x32xf32, #tpu.memory_space<vmem>>, vector<2x32xf32>,
      %cst_31 = arith.constant 0.000000e+00 : f32
      %25 = vector.broadcast %cst_31 : f32 to vector<2x32xf32>
      %c0_32 = arith.constant 0 : index
      %c0_33 = arith.constant 0 : index
      %26 = vector.load %arg11[%c0_32, %c0_33] : memref<2x32xf32, #tpu.memory_space<vmem>>, vector<2x32xf32>
      tpu.vector_store %arg11[%c0_32, %c0_33], %25 {strides = array<i32>} : memref<2x32xf32, #tpu.memory_space<vmem>>, vector<2x32xf32>,
    } else {
    }
    %c0 = arith.constant 0 : index
    %c0_1 = arith.constant 0 : index
    %3 = vector.load %arg9[%c0, %c0_1] : memref<2x32xf32, #tpu.memory_space<vmem>>, vector<2x32xf32>
    %c0_2 = arith.constant 0 : index
    %c0_3 = arith.constant 0 : index
    %c0_4 = arith.constant 0 : index
    %4 = vector.load %arg1[%c0_2, %c0_3, %c0_4] : memref<2x32x256xf32, #tpu.memory_space<vmem>>, vector<2x32x256xf32>
    %cst = arith.constant dense<0.000000e+00> : vector<2x32xf32>
    %5 = vector.multi_reduction <add>, %4, %cst [2] : vector<2x32x256xf32> to vector<2x32xf32>
    %6 = arith.addf %3, %5 : vector<2x32xf32>
    %c0_5 = arith.constant 0 : index
    %c0_6 = arith.constant 0 : index
    %7 = vector.load %arg9[%c0_5, %c0_6] : memref<2x32xf32, #tpu.memory_space<vmem>>, vector<2x32xf32>
    tpu.vector_store %arg9[%c0_5, %c0_6], %6 {strides = array<i32>} : memref<2x32xf32, #tpu.memory_space<vmem>>, vector<2x32xf32>,
    %c0_7 = arith.constant 0 : index
    %c0_8 = arith.constant 0 : index
    %8 = vector.load %arg10[%c0_7, %c0_8] : memref<2x32xf32, #tpu.memory_space<vmem>>, vector<2x32xf32>
    %c0_9 = arith.constant 0 : index
    %c0_10 = arith.constant 0 : index
    %c0_11 = arith.constant 0 : index
    %9 = vector.load %arg2[%c0_9, %c0_10, %c0_11] : memref<2x32x256xf32, #tpu.memory_space<vmem>>, vector<2x32x256xf32>
    %cst_12 = arith.constant dense<0.000000e+00> : vector<2x32xf32>
    %10 = vector.multi_reduction <add>, %9, %cst_12 [2] : vector<2x32x256xf32> to vector<2x32xf32>
    %11 = arith.addf %8, %10 : vector<2x32xf32>
    %c0_13 = arith.constant 0 : index
    %c0_14 = arith.constant 0 : index
    %12 = vector.load %arg10[%c0_13, %c0_14] : memref<2x32xf32, #tpu.memory_space<vmem>>, vector<2x32xf32>
    tpu.vector_store %arg10[%c0_13, %c0_14], %11 {strides = array<i32>} : memref<2x32xf32, #tpu.memory_space<vmem>>, vector<2x32xf32>,
    %c0_15 = arith.constant 0 : index
    %c0_16 = arith.constant 0 : index
    %13 = vector.load %arg11[%c0_15, %c0_16] : memref<2x32xf32, #tpu.memory_space<vmem>>, vector<2x32xf32>
    %c0_17 = arith.constant 0 : index
    %c0_18 = arith.constant 0 : index
    %c0_19 = arith.constant 0 : index
    %14 = vector.load %arg3[%c0_17, %c0_18, %c0_19] : memref<2x32x256xf32, #tpu.memory_space<vmem>>, vector<2x32x256xf32>
    %cst_20 = arith.constant dense<0.000000e+00> : vector<2x32xf32>
    %15 = vector.multi_reduction <add>, %14, %cst_20 [2] : vector<2x32x256xf32> to vector<2x32xf32>
    %16 = arith.addf %13, %15 : vector<2x32xf32>
    %c0_21 = arith.constant 0 : index
    %c0_22 = arith.constant 0 : index
    %17 = vector.load %arg11[%c0_21, %c0_22] : memref<2x32xf32, #tpu.memory_space<vmem>>, vector<2x32xf32>
    tpu.vector_store %arg11[%c0_21, %c0_22], %16 {strides = array<i32>} : memref<2x32xf32, #tpu.memory_space<vmem>>, vector<2x32xf32>,
    %c0_i32_23 = arith.constant 0 : i32
    %18 = arith.cmpi eq, %arg0, %c0_i32_23 : i32
    %19 = arith.extui %18 : i1 to i32
    %c0_i32_24 = arith.constant 0 : i32
    %20 = arith.cmpi ne, %19, %c0_i32_24 : i32
    scf.if %20 {
      %c0_25 = arith.constant 0 : index
      %c0_26 = arith.constant 0 : index
      %21 = vector.load %arg9[%c0_25, %c0_26] : memref<2x32xf32, #tpu.memory_space<vmem>>, vector<2x32xf32>
      %cst_27 = arith.constant 3.906250e-03 : f32
      %22 = vector.broadcast %cst_27 : f32 to vector<2x32xf32>
      %23 = arith.mulf %21, %22 : vector<2x32xf32>
      %c0_28 = arith.constant 0 : index
      %c0_29 = arith.constant 0 : index
      %24 = vector.load %arg4[%c0_28, %c0_29] : memref<32x10xf32, #tpu.memory_space<vmem>>, vector<32x10xf32>
      %cst_30 = arith.constant dense<0.000000e+00> : vector<2x10xf32>
      %25 = tpu.matmul %23, %24, %cst_30 {dimension_numbers = #tpu.dot_dimension_numbers<[1], [0], [0], [1], [0, 0, 1, 1], [], []>} : vector<2x32xf32>, vector<32x10xf32>, vector<2x10xf32> -> vector<2x10xf32>
      %c0_31 = arith.constant 0 : index
      %c0_32 = arith.constant 0 : index
      %26 = vector.load %arg10[%c0_31, %c0_32] : memref<2x32xf32, #tpu.memory_space<vmem>>, vector<2x32xf32>
      %cst_33 = arith.constant 3.906250e-03 : f32
      %27 = vector.broadcast %cst_33 : f32 to vector<2x32xf32>
      %28 = arith.mulf %26, %27 : vector<2x32xf32>
      %c0_34 = arith.constant 0 : index
      %c0_35 = arith.constant 0 : index
      %29 = vector.load %arg5[%c0_34, %c0_35] : memref<32x10xf32, #tpu.memory_space<vmem>>, vector<32x10xf32>
      %cst_36 = arith.constant dense<0.000000e+00> : vector<2x10xf32>
      %30 = tpu.matmul %28, %29, %cst_36 {dimension_numbers = #tpu.dot_dimension_numbers<[1], [0], [0], [1], [0, 0, 1, 1], [], []>} : vector<2x32xf32>, vector<32x10xf32>, vector<2x10xf32> -> vector<2x10xf32>
      %31 = arith.addf %25, %30 : vector<2x10xf32>
      %c0_37 = arith.constant 0 : index
      %c0_38 = arith.constant 0 : index
      %32 = vector.load %arg11[%c0_37, %c0_38] : memref<2x32xf32, #tpu.memory_space<vmem>>, vector<2x32xf32>
      %cst_39 = arith.constant 3.906250e-03 : f32
      %33 = vector.broadcast %cst_39 : f32 to vector<2x32xf32>
      %34 = arith.mulf %32, %33 : vector<2x32xf32>
      %c0_40 = arith.constant 0 : index
      %c0_41 = arith.constant 0 : index
      %35 = vector.load %arg6[%c0_40, %c0_41] : memref<32x10xf32, #tpu.memory_space<vmem>>, vector<32x10xf32>
      %cst_42 = arith.constant dense<0.000000e+00> : vector<2x10xf32>
      %36 = tpu.matmul %34, %35, %cst_42 {dimension_numbers = #tpu.dot_dimension_numbers<[1], [0], [0], [1], [0, 0, 1, 1], [], []>} : vector<2x32xf32>, vector<32x10xf32>, vector<2x10xf32> -> vector<2x10xf32>
      %37 = arith.addf %31, %36 : vector<2x10xf32>
      %c0_43 = arith.constant 0 : index
      %c0_44 = arith.constant 0 : index
      %38 = vector.load %arg7[%c0_43, %c0_44] : memref<1x10xf32, #tpu.memory_space<vmem>>, vector<1x10xf32>
      %39 = vector.broadcast %38 : vector<1x10xf32> to vector<2x10xf32>
      %40 = arith.addf %37, %39 : vector<2x10xf32>
      %c0_45 = arith.constant 0 : index
      %c0_46 = arith.constant 0 : index
      %41 = vector.load %arg8[%c0_45, %c0_46] : memref<2x10xf32, #tpu.memory_space<vmem>>, vector<2x10xf32>
      tpu.vector_store %arg8[%c0_45, %c0_46], %40 {strides = array<i32>} : memref<2x10xf32, #tpu.memory_space<vmem>>, vector<2x10xf32>,
    } else {
    }
    return
  }
  func.func @transform_0(%arg0: i32) -> (i32, i32, i32) {
    %c0_i32 = arith.constant 0 : i32
    %c0_i32_0 = arith.constant 0 : i32
    %c0_i32_1 = arith.constant 0 : i32
    return %c0_i32, %c0_i32_0, %arg0 : i32, i32, i32
  }
  func.func @transform_1(%arg0: i32) -> (i32, i32, i32) {
    %c0_i32 = arith.constant 0 : i32
    %c0_i32_0 = arith.constant 0 : i32
    %c0_i32_1 = arith.constant 0 : i32
    return %c0_i32, %c0_i32_0, %arg0 : i32, i32, i32
  }
  func.func @transform_2(%arg0: i32) -> (i32, i32, i32) {
    %c0_i32 = arith.constant 0 : i32
    %c0_i32_0 = arith.constant 0 : i32
    %c0_i32_1 = arith.constant 0 : i32
    return %c0_i32, %c0_i32_0, %arg0 : i32, i32, i32
  }
  func.func @transform_3(%arg0: i32) -> (i32, i32) {
    %c0_i32 = arith.constant 0 : i32
    %c0_i32_0 = arith.constant 0 : i32
    %c0_i32_1 = arith.constant 0 : i32
    return %c0_i32, %c0_i32_0 : i32, i32
  }
  func.func @transform_4(%arg0: i32) -> (i32, i32) {
    %c0_i32 = arith.constant 0 : i32
    %c0_i32_0 = arith.constant 0 : i32
    %c0_i32_1 = arith.constant 0 : i32
    return %c0_i32, %c0_i32_0 : i32, i32
  }
  func.func @transform_5(%arg0: i32) -> (i32, i32) {
    %c0_i32 = arith.constant 0 : i32
    %c0_i32_0 = arith.constant 0 : i32
    %c0_i32_1 = arith.constant 0 : i32
    return %c0_i32, %c0_i32_0 : i32, i32
  }
  func.func @transform_6(%arg0: i32) -> (i32, i32) {
    %c0_i32 = arith.constant 0 : i32
    %c0_i32_0 = arith.constant 0 : i32
    %c0_i32_1 = arith.constant 0 : i32
    return %c0_i32, %c0_i32_0 : i32, i32
  }
  func.func @transform_7(%arg0: i32) -> (i32, i32) {
    %c0_i32 = arith.constant 0 : i32
    %c0_i32_0 = arith.constant 0 : i32
    %c0_i32_1 = arith.constant 0 : i32
    return %c0_i32, %c0_i32_0 : i32, i32
  }
}

</mosaic_0001>

<bundles_post_ra>
// kernel: tpu_custom_call.1
= control target key start
LH: loop header
LB: loop body
LE: loop exit
PB: predicated region body
PF: predicated region fallthrough
CT: control target
= control target key end

     0   :  { %12 = vsyncpa [#allocation6], 0  ;;  %s1012_s0 = inlined_call_operand.vmem [shape: f32[2,32,256], index: 0, kind: input, shape index: {}]   ;;  %s1013_s1 = inlined_call_operand.hbm [shape: f32[2,32,256], index: 1, kind: input, shape index: {}]   ;;  %s1014_s2 = inlined_call_operand.hbm [shape: f32[2,32,256], index: 2, kind: input, shape index: {}]   ;;  %s1015_s3 = inlined_call_operand.vmem [shape: f32[32,10], index: 3, kind: input, shape index: {}]   ;;  %s1016_s4 = inlined_call_operand.vmem [shape: f32[32,10], index: 4, kind: input, shape index: {}]   ;;  %s1017_s5 = inlined_call_operand.vmem [shape: f32[32,10], index: 5, kind: input, shape index: {}]   ;;  %s1018_s6 = inlined_call_operand.vmem [shape: f32[1,10], index: 6, kind: input, shape index: {}]   ;;  %s1019_s7 = inlined_call_operand.hbm [shape: f32[2,10], index: 7, kind: output, shape index: {}]  }
   0x1   :  { %13 = vsyncpa [#allocation9], 0 }
   0x2   :  { %14 = vsyncpa [#allocation7], 0  ;;  %s764_s24 = smov [#allocation5]   ;;  %s692_s28 = scalar_lea.hbm %s1013_s1, 2048 }
   0x3   :  { %s22_s25 = sshll.u32 %s764_s24, 4  ;;  %p693_p0 = scmp.ne.s32.totalorder %s1013_s1, %s692_s28  ;;  %s23_s25 = int_to_ptr.vmem [resolvable:$true] %s22_s25 }
   0x4   :  { %p696_p1 = scmp.lt.u32.totalorder %s692_s28, %s1013_s1 }
   0x6   :  { %p698_p2 = pnand %p696_p1, %p693_p0 }
   0x8   :  { %701 = shalt.err (!%p698_p2)
}
   0x9   :  { %s702_s10 = scalar_lea.vmem %s23_s25, 2048  ;;  %p707_p4 = scmp.lt.s32.totalorder %s23_s25, %s23_s25 }
   0xa   :  { %p703_p3 = scmp.ne.s32.totalorder %s23_s25, %s702_s10  ;;  %p708_p5 = scmp.lt.s32.totalorder %s702_s10, %s702_s10 }
   0xc   :  { %p709_p6 = por %p708_p5, %p707_p4 }
   0xe   :  { %p710_p7 = pnand %p709_p6, %p703_p3 }
  0x10   :  { %713 = shalt.err (!%p710_p7)
}
  0x11   :  { %s765_s11 = smov 256   ;;  %s766_s12 = smov 16  }
  0x12   :  { %28 = dma.hbm_to_vmem [thread:$0]  %s1013_s1, 2048, %s23_s25, [#allocation6], %s765_s11, %s765_s11, %s766_s12  }
  0x13   :  { %s767_s15 = smov [#allocation8]   ;;  %s714_s19 = scalar_lea.hbm %s1014_s2, 2048 }
  0x14   :  { %s34_s16 = sshll.u32 %s767_s15, 4  ;;  %p715_p8 = scmp.ne.s32.totalorder %s1014_s2, %s714_s19  ;;  %s35_s16 = int_to_ptr.vmem [resolvable:$true] %s34_s16 }
  0x15   :  { %p718_p9 = scmp.lt.u32.totalorder %s714_s19, %s1014_s2 }
  0x17   :  { %p720_p10 = pnand %p718_p9, %p715_p8 }
  0x19   :  { %723 = shalt.err (!%p720_p10)
}
  0x1a   :  { %s724_s24 = scalar_lea.vmem %s35_s16, 2048  ;;  %p729_p12 = scmp.lt.s32.totalorder %s35_s16, %s35_s16 }
  0x1b   :  { %p725_p11 = scmp.ne.s32.totalorder %s35_s16, %s724_s24  ;;  %p730_p13 = scmp.lt.s32.totalorder %s724_s24, %s724_s24 }
  0x1d   :  { %p731_p0 = por %p730_p13, %p729_p12 }
  0x1f   :  { %p732_p1 = pnand %p731_p0, %p725_p11 }
  0x21   :  { %735 = shalt.err (!%p732_p1)
}
  0x22   :  { %40 = dma.hbm_to_vmem [thread:$0]  %s1014_s2, 2048, %s35_s16, [#allocation9], %s765_s11, %s765_s11, %s766_s12  }
  0x23   :  { %758 = dma.done.wait [#allocation6], 2048  }
  0x24   :  { %759 = vsyncadd [#allocation6], 4294965248 }
  0x25   :  { %760 = dma.done.wait [#allocation9], 2048  }
  0x26   :  { %761 = vsyncadd [#allocation9], 4294965248  ;;  %v173_v0 = vld [vmem:[#allocation5 + $0x40] sm:$0xff]  ;;  %v174_v1 = vld [vmem:[#allocation5 + $0x48] sm:$0xff]  ;;  %vm59_vm0 = vcmask 254976   ;;  %v768_v46 = vmov 0.0  }
  0x27   :  { %v165_v2 = vld [vmem:[#allocation5] sm:$0xff]  ;;  %v193_v3 = vadd.f32 %v174_v1, %v173_v0  ;;  %v166_v4 = vld [vmem:[#allocation5 + $0x8] sm:$0xff]  ;;  %v175_v5 = vld [vmem:[#allocation5 + $0x50] sm:$0xff]  ;;  %61 = vst.msk [vmem:[#allocation3] sm:$0x3] %vm59_vm0, %v768_v46  ;;  %vm770_vm1 = vmmov 0  }
  0x28   :  { %v176_v6 = vld [vmem:[#allocation5 + $0x58] sm:$0xff]  ;;  %v181_v7 = vadd.f32 %v166_v4, %v165_v2  ;;  %v167_v8 = vld [vmem:[#allocation5 + $0x10] sm:$0xff]  ;;  %v177_v12 = vld [vmem:[#allocation5 + $0x60] sm:$0xff]  ;;  %60 = vst.msk [vmem:[#allocation2] sm:$0x3] %vm59_vm0, %v768_v46  ;;  %v769_v4 = vmov 0.0|0.0   ;;  %641 = vmatprep.mubr.msk.f32.mxu0 %vm770_vm1, %v768_v46  ;;  %652 = vmatprep.mubr.msk.f32.mxu1 %vm770_vm1, %v768_v46 }
  0x29   :  { %v168_v9 = vld [vmem:[#allocation5 + $0x18] sm:$0xff]  ;;  %194 = vadd.xlane.f32.xlu1 %v193_v3  ;;  %v196_v10 = vadd.f32 %v176_v6, %v175_v5  ;;  %v178_v13 = vld [vmem:[#allocation5 + $0x68] sm:$0xff]  ;;  %v169_v14 = vld [vmem:[#allocation5 + $0x20] sm:$0xff]  ;;  %62 = vst.msk [vmem:[#allocation4] sm:$0x3] %vm59_vm0, %v768_v46  ;;  %666 = vmatprep.subr.bf16.mxu0 %v769_v4  ;;  %vm123_vm2 = vcmask 130112  }
  0x2a   :  { %182 = vadd.xlane.f32.xlu0 %v181_v7  ;;  %v184_v11 = vadd.f32 %v168_v9, %v167_v8  ;;  %v170_v15 = vld [vmem:[#allocation5 + $0x28] sm:$0xff]  ;;  %v199_v16 = vadd.f32 %v178_v13, %v177_v12  ;;  %v179_v18 = vld [vmem:[#allocation5 + $0x70] sm:$0xff]  ;;  %v180_v19 = vld [vmem:[#allocation5 + $0x78] sm:$0xff]  ;;  %672 = vmatprep.subr.bf16.mxu1 %v769_v4  ;;  %vm130_vm3 = vcmask 195712   ;;  %vm137_vm4 = vcmask 261312   ;;  %s771_s29 = smov [#allocation10]  }
  0x2b   :  { %v187_v17 = vadd.f32 %v170_v15, %v169_v14  ;;  %v171_v20 = vld [vmem:[#allocation5 + $0x30] sm:$0xff]  ;;  %v172_v21 = vld [vmem:[#allocation5 + $0x38] sm:$0xff]  ;;  %v202_v22 = vadd.f32 %v180_v19, %v179_v18  ;;  %v65_v27 = vld [vmem:[%s1012_s0 + $0x8] sm:$0xff]  ;;  %vm158_vm5 = vcmask 1041409   ;;  %vm361_vm6 = vcmask 261120   ;;  %s604_s30 = sshll.u32 %s771_s29, 4  ;;  %s605_s30 = int_to_ptr.vmem [resolvable:$true] %s604_s30 }
  0x2c   :  { %v190_v23 = vadd.f32 %v172_v21, %v171_v20  ;;  %v66_v24 = vld [vmem:[%s1012_s0 + $0x10] sm:$0xff]  ;;  %v67_v25 = vld [vmem:[%s1012_s0 + $0x18] sm:$0xff]  ;;  %v64_v26 = vld [vmem:[%s1012_s0] sm:$0xff]  ;;  %vm596_vm7 = vcmask 74752   ;;  %s736_s8 = scalar_lea.vmem %s605_s30, 32  ;;  %p741_p3 = scmp.lt.s32.totalorder %s605_s30, %s605_s30 }
  0x2d   :  { %197 = vadd.xlane.f32.xlu1 %v196_v10  ;;  %v83_v28 = vadd.f32 %v67_v25, %v66_v24  ;;  %v80_v29 = vadd.f32 %v65_v27, %v64_v26  ;;  %v74_v30 = vld [vmem:[%s1012_s0 + $0x50] sm:$0xff]  ;;  %v75_v31 = vld [vmem:[%s1012_s0 + $0x58] sm:$0xff]  ;;  %v72_v32 = vld [vmem:[%s1012_s0 + $0x40] sm:$0xff]  ;;  %p737_p2 = scmp.ne.s32.totalorder %s605_s30, %s736_s8  ;;  %p742_p4 = scmp.lt.s32.totalorder %s736_s8, %s736_s8 }
  0x2e   :  { %185 = vadd.xlane.f32.xlu0 %v184_v11  ;;  %v73_v33 = vld [vmem:[%s1012_s0 + $0x48] sm:$0xff]  ;;  %v95_v34 = vadd.f32 %v75_v31, %v74_v30  ;;  %v76_v36 = vld [vmem:[%s1012_s0 + $0x60] sm:$0xff]  ;;  %v78_v42 = vld [vmem:[%s1012_s0 + $0x70] sm:$0xff] }
  0x2f   :  { %v92_v35 = vadd.f32 %v73_v33, %v72_v32  ;;  %v77_v37 = vld [vmem:[%s1012_s0 + $0x68] sm:$0xff]  ;;  %v68_v38 = vld [vmem:[%s1012_s0 + $0x20] sm:$0xff]  ;;  %v79_v43 = vld [vmem:[%s1012_s0 + $0x78] sm:$0xff]  ;;  %p743_p5 = por %p742_p4, %p741_p3 }
  0x30   :  { %v69_v39 = vld [vmem:[%s1012_s0 + $0x28] sm:$0xff]  ;;  %v98_v40 = vadd.f32 %v77_v37, %v76_v36  ;;  %v70_v44 = vld [vmem:[%s1012_s0 + $0x30] sm:$0xff]  ;;  %v71_v45 = vld [vmem:[%s1012_s0 + $0x38] sm:$0xff]  ;;  %v101_v47 = vadd.f32 %v79_v43, %v78_v42 }
  0x31   :  { %200 = vadd.xlane.f32.xlu1 %v199_v16  ;;  %v86_v41 = vadd.f32 %v69_v39, %v68_v38  ;;  %v89_v48 = vadd.f32 %v71_v45, %v70_v44  ;;  %v258_v49 = vld [vmem:[#allocation8 + $0x10] sm:$0xff]  ;;  %v259_v50 = vld [vmem:[#allocation8 + $0x18] sm:$0xff]  ;;  %v256_v51 = vld [vmem:[#allocation8] sm:$0xff]  ;;  %p744_p6 = pnand %p743_p5, %p737_p2 }
  0x32   :  { %188 = vadd.xlane.f32.xlu0 %v187_v17  ;;  %v257_v52 = vld [vmem:[#allocation8 + $0x8] sm:$0xff]  ;;  %v275_v53 = vadd.f32 %v259_v50, %v258_v49  ;;  %v266_v55 = vld [vmem:[#allocation8 + $0x50] sm:$0xff]  ;;  %v267_v56 = vld [vmem:[#allocation8 + $0x58] sm:$0xff] }
  0x33   :  { %v272_v54 = vadd.f32 %v257_v52, %v256_v51  ;;  %v264_v57 = vld [vmem:[#allocation8 + $0x40] sm:$0xff]  ;;  %v265_v58 = vld [vmem:[#allocation8 + $0x48] sm:$0xff]  ;;  %v287_v59 = vadd.f32 %v267_v56, %v266_v55  ;;  %v270_v6 = vld [vmem:[#allocation8 + $0x70] sm:$0xff] }
  0x34   :  { %v268_v60 = vld [vmem:[#allocation8 + $0x60] sm:$0xff]  ;;  %v284_v61 = vadd.f32 %v265_v58, %v264_v57  ;;  %v269_v62 = vld [vmem:[#allocation8 + $0x68] sm:$0xff]  ;;  %v271_v8 = vld [vmem:[#allocation8 + $0x78] sm:$0xff] }
  0x35   :  { %203 = vadd.xlane.f32.xlu1 %v202_v22  ;;  %v357_v63 = vld [vmem:[%s1016_s4] sm:$0xff]  ;;  %v358_v0 = vld [vmem:[%s1016_s4 + $0x8] sm:$0xff]  ;;  %v290_v5 = vadd.f32 %v269_v62, %v268_v60  ;;  %v359_v9 = vld [vmem:[%s1016_s4 + $0x10] sm:$0xff]  ;;  %v293_v14 = vadd.f32 %v271_v8, %v270_v6  ;;  %v112_v22 = vlaneseq }
  0x36   :  { %191 = vadd.xlane.f32.xlu0 %v190_v23  ;;  %v260_v1 = vld [vmem:[#allocation8 + $0x20] sm:$0xff]  ;;  %v261_v2 = vld [vmem:[#allocation8 + $0x28] sm:$0xff]  ;;  %v667_v3 = vpack.c.bf16 %v358_v0, %v357_v63  ;;  %v360_v10 = vld [vmem:[%s1016_s4 + $0x18] sm:$0xff] }
  0x37   :  { %v278_v7 = vadd.f32 %v261_v2, %v260_v1  ;;  %v262_v11 = vld [vmem:[#allocation8 + $0x30] sm:$0xff]  ;;  %v263_v12 = vld [vmem:[#allocation8 + $0x38] sm:$0xff]  ;;  %v670_v13 = vpack.c.bf16 %v360_v10, %v359_v9  ;;  %v352_v17 = vld [vmem:[%s1015_s3 + $0x8] sm:$0xff]  ;;  %v113_v23 = vand.u32 127, %v112_v22 }
  0x38   :  { %668 = vmatpush3.bf16.msra.mxu0 %v667_v3  ;;  %v281_v15 = vadd.f32 %v263_v12, %v262_v11  ;;  %v351_v16 = vld [vmem:[%s1015_s3] sm:$0xff]  ;;  %v353_v19 = vld [vmem:[%s1015_s3 + $0x10] sm:$0xff]  ;;  %v354_v20 = vld [vmem:[%s1015_s3 + $0x18] sm:$0xff] }
  0x39   :  { %84 = vadd.xlane.f32.xlu1 %v83_v28  ;;  %669 = vmatprep.subr.bf16.mxu0 %v769_v4  ;;  %v673_v18 = vpack.c.bf16 %v352_v17, %v351_v16  ;;  %v676_v21 = vpack.c.bf16 %v354_v20, %v353_v19  ;;  %v118_v26 = vadd.s32 4294967288, %v113_v23  ;;  %v125_v27 = vadd.s32 4294967280, %v113_v23  ;;  %v510_v63 = vld [vmem:[%s1017_s5] sm:$0xff]  ;;  %v511_v0 = vld [vmem:[%s1017_s5 + $0x8] sm:$0xff] }
  0x3a   :  { %81 = vadd.xlane.f32.xlu0 %v80_v29  ;;  %v115_v28 = vshrl.u32 %v112_v22, 7  ;;  %v132_v32 = vadd.s32 4294967272, %v113_v23  ;;  %v679_v10 = vpack.c.bf16 %v511_v0, %v510_v63 }
  0x3b   :  { %674 = vmatpush3.bf16.msra.mxu1 %v673_v18 }
  0x3c   :  { %671 = vmatpush3.bf16.msra.mxu0 %v670_v13  ;;  %675 = vmatprep.subr.bf16.mxu1 %v769_v4  ;;  %v923_v30 = vsub.s32 %v118_v26, %v115_v28  ;;  %v925_v33 = vsub.s32 %v125_v27, %v115_v28  ;;  %v930_v38 = vsub.s32 %v132_v32, %v115_v28  ;;  %v512_v13 = vld [vmem:[%s1017_s5 + $0x10] sm:$0xff] }
  0x3d   :  { %96 = vadd.xlane.f32.xlu1 %v95_v34  ;;  %678 = vmatprep.subr.bf16.mxu0 %v769_v4  ;;  %v927_v34 = vsub.s32 %v113_v23, %v115_v28  ;;  %v63_v23 = vld [vmem:[#allocation2] sm:$0x3] }
  0x3e   :  { %93 = vadd.xlane.f32.xlu0 %v92_v35 }
  0x3f   :  { %677 = vmatpush3.bf16.msra.mxu1 %v676_v21 }
  0x41   :  { %99 = vadd.xlane.f32.xlu1 %v98_v40 }
  0x42   :  { %87 = vadd.xlane.f32.xlu0 %v86_v41 }
  0x45   :  { %102 = vadd.xlane.f32.xlu1 %v101_v47 }
  0x46   :  { %90 = vadd.xlane.f32.xlu0 %v89_v48 }
  0x49   :  { %276 = vadd.xlane.f32.xlu1 %v275_v53 }
  0x4a   :  { %273 = vadd.xlane.f32.xlu0 %v272_v54  ;;  %v164_v54 = vld [vmem:[#allocation3] sm:$0x3] }
  0x4d   :  { %288 = vadd.xlane.f32.xlu1 %v287_v59 }
  0x4e   :  { %285 = vadd.xlane.f32.xlu0 %v284_v61 }
  0x51   :  { %291 = vadd.xlane.f32.xlu1 %v290_v5 }
  0x52   :  { %279 = vadd.xlane.f32.xlu0 %v278_v7 }
  0x55   :  { %294 = vadd.xlane.f32.xlu1 %v293_v14  ;;  %v513_v14 = vld [vmem:[%s1017_s5 + $0x18] sm:$0xff] }
  0x56   :  { %282 = vadd.xlane.f32.xlu0 %v281_v15 }
  0xb6   :  { %v195_v24 = vpop.xlane.xlu1 %194 }
  0xb7   :  { %v183_v25 = vpop.xlane.xlu0 %182  ;;  %v235_v41 = vrot.slane %v195_v24, %v927_v34  ;;  %v682_v24 = vpack.c.bf16 %v513_v14, %v512_v13 }
  0xb8   :  { %v216_v43 = vrot.slane %v183_v25, %v927_v34 }
  0xba   :  { %v198_v29 = vpop.xlane.xlu1 %197 }
  0xbb   :  { %v186_v31 = vpop.xlane.xlu0 %185  ;;  %v239_v36 = vrot.slane %v198_v29, %v923_v30 }
  0xbc   :  { %v220_v39 = vrot.slane %v186_v31, %v923_v30 }
  0xbd   :  { %v240_v45 = vsel %vm123_vm2, %v239_v36, %v235_v41 }
  0xbe   :  { %v201_v35 = vpop.xlane.xlu1 %200  ;;  %v221_v49 = vsel %vm123_vm2, %v220_v39, %v216_v43 }
  0xbf   :  { %v189_v37 = vpop.xlane.xlu0 %188  ;;  %v244_v40 = vrot.slane %v201_v35, %v925_v33 }
  0xc0   :  { %v225_v42 = vrot.slane %v189_v37, %v925_v33 }
  0xc1   :  { %v245_v50 = vsel %vm130_vm3, %v244_v40, %v240_v45 }
  0xc2   :  { %v204_v44 = vpop.xlane.xlu1 %203  ;;  %v226_v52 = vsel %vm130_vm3, %v225_v42, %v221_v49 }
  0xc3   :  { %v249_v47 = vrot.slane %v204_v44, %v930_v38  ;;  %v192_v48 = vpop.xlane.xlu0 %191 }
  0xc4   :  { %v230_v51 = vrot.slane %v192_v48, %v930_v38 }
  0xc5   :  { %v250_v53 = vsel %vm137_vm4, %v249_v47, %v245_v50 }
  0xc6   :  { %v231_v55 = vsel %vm137_vm4, %v230_v51, %v226_v52  ;;  %v85_v56 = vpop.xlane.xlu1 %84  ;;  %v255_v51 = vld [vmem:[#allocation4] sm:$0x3] }
  0xc7   :  { %v251_v57 = vsel %vm158_vm5, %v250_v53, %v231_v55  ;;  %v82_v58 = vpop.xlane.xlu0 %81  ;;  %v122_v5 = vrot.slane %v85_v56, %v923_v30 }
  0xc8   :  { %v253_v59 = vadd.f32 %v251_v57, %v164_v54  ;;  %v117_v6 = vrot.slane %v82_v58, %v927_v34 }
  0xca   :  { %254 = vst.msk [vmem:[#allocation3] sm:$0x3] %vm59_vm0, %v253_v59  ;;  %v97_v60 = vpop.xlane.xlu1 %96  ;;  %v124_v18 = vsel %vm123_vm2, %v122_v5, %v117_v6 }
  0xcb   :  { %v94_v61 = vpop.xlane.xlu0 %93  ;;  %v146_v1 = vrot.slane %v97_v60, %v923_v30 }
  0xcc   :  { %v142_v2 = vrot.slane %v94_v61, %v927_v34 }
  0xce   :  { %v100_v62 = vpop.xlane.xlu1 %99  ;;  %v147_v15 = vsel %vm123_vm2, %v146_v1, %v142_v2 }
  0xcf   :  { %v88_v3 = vpop.xlane.xlu0 %87  ;;  %v151_v7 = vrot.slane %v100_v62, %v925_v33  ;;  %v617_v62 = vld [vmem:[%s1018_s6] ss:$0 sm:$0xff] }
  0xd0   :  { %v129_v8 = vrot.slane %v88_v3, %v925_v33 }
  0xd1   :  { %v355_v9 = vld [vmem:[#allocation3] sm:$0x3]  ;;  %v152_v19 = vsel %vm130_vm3, %v151_v7, %v147_v15 }
  0xd2   :  { %v103_v11 = vpop.xlane.xlu1 %102  ;;  %v356_v12 = vmul.f32 0.00390625, %v355_v9  ;;  %v131_v21 = vsel %vm130_vm3, %v129_v8, %v124_v18 }
  0xd3   :  { %v156_v16 = vrot.slane %v103_v11, %v930_v38  ;;  %v91_v17 = vpop.xlane.xlu0 %90 }
  0xd4   :  { %v136_v20 = vrot.slane %v91_v17, %v930_v38  ;;  %642 = vmatmul.mubr.msk.f32.vlgmr.msra.gmra.mrb[0].mxu0 %vm361_vm6, %v356_v12 }
  0xd5   :  { %v157_v22 = vsel %vm137_vm4, %v156_v16, %v152_v19  ;;  %680 = vmatpush3.bf16.msra.mxu0 %v679_v10  ;;  %663 = vmatprep.mubr.msk.f32.mxu0 %vm770_vm1, %v768_v46 }
  0xd6   :  { %v138_v25 = vsel %vm137_vm4, %v136_v20, %v131_v21  ;;  %v277_v26 = vpop.xlane.xlu1 %276  ;;  %681 = vmatprep.subr.bf16.mxu0 %v769_v4 }
  0xd7   :  { %v159_v27 = vsel %vm158_vm5, %v157_v22, %v138_v25  ;;  %v274_v28 = vpop.xlane.xlu0 %273  ;;  %v311_v39 = vrot.slane %v277_v26, %v923_v30 }
  0xd8   :  { %v161_v29 = vadd.f32 %v159_v27, %v63_v23  ;;  %v307_v40 = vrot.slane %v274_v28, %v927_v34 }
  0xd9   :  { %683 = vmatpush3.bf16.msra.mxu0 %v682_v24 }
  0xda   :  { %163 = vst.msk [vmem:[#allocation2] sm:$0x3] %vm59_vm0, %v161_v29  ;;  %v289_v31 = vpop.xlane.xlu1 %288  ;;  %v312_v49 = vsel %vm123_vm2, %v311_v39, %v307_v40 }
  0xdb   :  { %v286_v32 = vpop.xlane.xlu0 %285  ;;  %v330_v36 = vrot.slane %v289_v31, %v923_v30 }
  0xdc   :  { %v326_v37 = vrot.slane %v286_v32, %v927_v34 }
  0xde   :  { %v292_v35 = vpop.xlane.xlu1 %291  ;;  %v331_v45 = vsel %vm123_vm2, %v330_v36, %v326_v37 }
  0xdf   :  { %v280_v46 = vpop.xlane.xlu0 %279  ;;  %v335_v4 = vrot.slane %v292_v35, %v925_v33 }
  0xe0   :  { %v316_v41 = vrot.slane %v280_v46, %v925_v33 }
  0xe1   :  { %v349_v42 = vld [vmem:[#allocation2] sm:$0x3]  ;;  %v336_v50 = vsel %vm130_vm3, %v335_v4, %v331_v45 }
  0xe2   :  { %v295_v43 = vpop.xlane.xlu1 %294  ;;  %v350_v44 = vmul.f32 0.00390625, %v349_v42  ;;  %v317_v34 = vsel %vm130_vm3, %v316_v41, %v312_v49 }
  0xe3   :  { %v340_v47 = vrot.slane %v295_v43, %v930_v38  ;;  %v283_v48 = vpop.xlane.xlu0 %282 }
  0xe4   :  { %v321_v30 = vrot.slane %v283_v48, %v930_v38  ;;  %653 = vmatmul.mubr.msk.f32.vlgmr.msra.gmra.mrb[0].mxu1 %vm361_vm6, %v350_v44 }
  0xe5   :  { %v341_v33 = vsel %vm137_vm4, %v340_v47, %v336_v50 }
  0xe6   :  { %v322_v52 = vsel %vm137_vm4, %v321_v30, %v317_v34 }
  0xe7   :  { %v342_v53 = vsel %vm158_vm5, %v341_v33, %v322_v52 }
  0xe8   :  { %v344_v54 = vadd.f32 %v342_v53, %v255_v51 }
  0xea   :  { %345 = vst.msk [vmem:[#allocation4] sm:$0x3] %vm59_vm0, %v344_v54 }
  0xf1   :  { %v508_v55 = vld [vmem:[#allocation4] sm:$0x3] }
  0xf2   :  { %v509_v56 = vmul.f32 0.00390625, %v508_v55 }
  0xf4   :  { %664 = vmatmul.mubr.msk.f32.vlgmr.msra.gmra.mrb[2].mxu0 %vm361_vm6, %v509_v56 }
 0x1a7   :  { %v431_v57 = vpop.f32.mrb[0].mxu0 }
 0x1a8   :  { %v643_v38 = vpop.f32.mrb[1].mxu0 }
 0x1b7   :  { %v504_v58 = vpop.f32.mrb[0].mxu1 }
 0x1b8   :  { %v505_v59 = vadd.f32 %v504_v58, %v431_v57  ;;  %v654_v60 = vpop.f32.mrb[1].mxu1 }
 0x1c7   :  { %v583_v61 = vpop.f32.mrb[2].mxu0 }
 0x1c8   :  { %v587_v63 = vadd.f32 %v583_v61, %v505_v59  ;;  %v665_v0 = vpop.f32.mrb[3].mxu0 }
 0x1ca   :  { %v595_v1 = vadd.f32 %v617_v62, %v587_v63 }
 0x1cc   :  { %597 = vst.msk [vmem:[#allocation10] sm:$0x3] %vm596_vm7, %v595_v1 }
 0x1cd   :  { %747 = shalt.err (!%p744_p6)
}
 0x1ce   :  { %s748_s10 = scalar_lea.hbm %s1019_s7, 32 }
 0x1cf   :  { %p749_p7 = scmp.ne.s32.totalorder %s1019_s7, %s748_s10  ;;  %p752_p8 = scmp.lt.u32.totalorder %s748_s10, %s1019_s7 }
 0x1d1   :  { %p754_p9 = pnand %p752_p8, %p749_p7 }
 0x1d3   :  { %757 = shalt.err (!%p754_p9)
}
 0x1d4   :  { %607 = dma.vmem_to_hbm [thread:$0]  %s605_s30, 32, %s1019_s7, [#allocation7]  }
 0x1d5   :  { %762 = dma.done.wait [#allocation7], 32  }
 0x1d6   :  { %763 = vsyncadd [#allocation7], 4294967264 }
 0x1d7   :  { %611 = vsyncpa [#allocation6], 1 }
 0x1d8   :  { %612 = vsyncpa [#allocation9], 1 }
 0x1d9   :  { %613 = vsyncpa [#allocation7], 1 }

</bundles_post_ra>
